<compile_context>
chip_gen: v6e
topology: v6e:2x2x1
jax: 0.10.0
libtpu: 0.0.40
codegen_flags: <defaults>
</compile_context>

<pallas_src>
import functools
import math

import jax
import jax.numpy as jnp
from jax.experimental import pallas as pl
from jax.experimental.pallas import tpu as pltpu

EPS = 1e-6  # LayerNormalization eps (added to std, matching the PyTorch module)

_SMEM_SPEC = pl.BlockSpec(memory_space=pltpu.MemorySpace.SMEM)
_PARALLEL = pltpu.CompilerParams(dimension_semantics=("parallel",))


# ----------------------------------------------------------------------------
# tiling helpers
# ----------------------------------------------------------------------------
def _pick_row_tile(rows, row_bytes, budget_bytes=4 << 20, sublane=8):
    """Largest divisor of `rows` (multiple of 8) whose block fits the budget."""
    if rows * row_bytes <= budget_bytes:
        return rows
    limit = max(1, budget_bytes // max(1, row_bytes))
    best = None
    for cand in range(sublane, min(limit, rows) + 1, sublane):
        if rows % cand == 0:
            best = cand
    return best if best is not None else rows


def _lane_dense_view(total, d):
    """2-D view for purely elementwise kernels with a lane-dense last dim."""
    if d % 128 == 0:
        return (total // d, d)
    if total % 128 == 0:
        c = 128
        while total % (2 * c) == 0 and (2 * c) <= 2048:
            c *= 2
        return (total // c, c)
    return (total // d, d)


# ----------------------------------------------------------------------------
# Kernel 1: LayerNormalization  (mean / unbiased std over last dim, scalar g,b)
#   out = gamma * (x - mean) / (std + eps) + beta
# ----------------------------------------------------------------------------
def _layernorm_kernel(gamma_ref, beta_ref, x_ref, o_ref):
    x = x_ref[...].astype(jnp.float32)
    d = x.shape[-1]
    mean = jnp.mean(x, axis=-1, keepdims=True)
    diff = x - mean
    # torch.Tensor.std default: Bessel's correction (divide by d-1)
    var = jnp.sum(diff * diff, axis=-1, keepdims=True) / (d - 1)
    inv = 1.0 / (jnp.sqrt(var) + EPS)  # per-row scalar; exact
    o_ref[...] = (gamma_ref[0] * (diff * inv) + beta_ref[0]).astype(o_ref.dtype)


def layer_norm(x, gamma, beta):
    shape = x.shape
    d = shape[-1]
    assert d > 1, "LayerNorm needs hidden dim > 1 (unbiased std divides by d-1)"
    x2 = x.reshape(-1, d)
    rows = x2.shape[0]
    row_tile = _pick_row_tile(rows, d * max(4, x2.dtype.itemsize))
    spec = pl.BlockSpec((row_tile, d), lambda i: (i, 0))
    out = pl.pallas_call(
        _layernorm_kernel,
        out_shape=jax.ShapeDtypeStruct((rows, d), x.dtype),
        grid=(rows // row_tile,),
        in_specs=[_SMEM_SPEC, _SMEM_SPEC, spec],
        out_specs=spec,
        compiler_params=_PARALLEL,
    )(gamma.astype(jnp.float32), beta.astype(jnp.float32), x2)
    return out.reshape(shape)


# ----------------------------------------------------------------------------
# Kernel 2: residual add (+ optional dropout on the sublayer output)
# ----------------------------------------------------------------------------
def _residual_add_kernel(x_ref, z_ref, o_ref):
    o_ref[...] = (x_ref[...] + z_ref[...].astype(x_ref.dtype)).astype(o_ref.dtype)


def _residual_dropout_add_kernel(x_ref, z_ref, u_ref, o_ref, *, p):
    scale = 1.0 / (1.0 - p)
    # single select + single multiply (no cast + double multiply)
    keep = jnp.where(u_ref[...] >= p, scale, 0.0)
    z = z_ref[...].astype(jnp.float32) * keep
    o_ref[...] = (x_ref[...].astype(jnp.float32) + z).astype(o_ref.dtype)


def residual_dropout_add(x, z, dropout_p, key=None):
    shape = x.shape
    d = shape[-1]
    total = x.size
    r, c = _lane_dense_view(total, d)          # lane-dense elementwise view
    x2 = x.reshape(r, c)
    z2 = z.astype(x.dtype).reshape(r, c)
    row_tile = _pick_row_tile(r, c * 4)
    spec = pl.BlockSpec((row_tile, c), lambda i: (i, 0))
    grid = (r // row_tile,)
    if dropout_p > 0.0:
        assert 0.0 < dropout_p < 1.0, "dropout p must be in [0, 1)"
        assert key is not None, "need a PRNG key for dropout"
        u = jax.random.uniform(key, (r, c), dtype=jnp.float32)
        kernel = functools.partial(_residual_dropout_add_kernel, p=float(dropout_p))
        out = pl.pallas_call(
            kernel,
            out_shape=jax.ShapeDtypeStruct((r, c), x.dtype),
            grid=grid,
            in_specs=[spec, spec, spec],
            out_specs=spec,
            compiler_params=_PARALLEL,
        )(x2, z2, u)
    else:
        out = pl.pallas_call(
            _residual_add_kernel,
            out_shape=jax.ShapeDtypeStruct((r, c), x.dtype),
            grid=grid,
            in_specs=[spec, spec],
            out_specs=spec,
            compiler_params=_PARALLEL,
        )(x2, z2)
    return out.reshape(shape)


# ----------------------------------------------------------------------------
# Split path: ResidualConnection.forward(x, sublayer) for an OPAQUE sublayer
# ----------------------------------------------------------------------------
def residual_connection(x, sublayer, gamma, beta, dropout_p, key=None):
    y = layer_norm(x, gamma, beta)
    z = sublayer(y)                 # arbitrary external callable (plain JAX)
    return residual_dropout_add(x, z, dropout_p, key)


# ----------------------------------------------------------------------------
# Fused path: LayerNorm -> (y @ W) -> dropout -> + x  in a single pallas_call,
# for the common case where the sublayer is a known linear projection.
# Removes 3 of the 5 HBM passes of the split path.
# ----------------------------------------------------------------------------
def _ln_linear(gamma_ref, beta_ref, x_ref, w_ref):
    x = x_ref[...].astype(jnp.float32)
    d = x.shape[-1]
    mean = jnp.mean(x, axis=-1, keepdims=True)
    diff = x - mean
    var = jnp.sum(diff * diff, axis=-1, keepdims=True) / (d - 1)
    inv = 1.0 / (jnp.sqrt(var) + EPS)
    y = gamma_ref[0] * (diff * inv) + beta_ref[0]
    z = jnp.dot(y, w_ref[...].astype(jnp.float32),
                preferred_element_type=jnp.float32)
    return x, z


def _fused_eval_kernel(gamma_ref, beta_ref, x_ref, w_ref, o_ref):
    x, z = _ln_linear(gamma_ref, beta_ref, x_ref, w_ref)
    o_ref[...] = (x + z).astype(o_ref.dtype)


def _fused_train_kernel(gamma_ref, beta_ref, x_ref, w_ref, u_ref, o_ref, *, p):
    x, z = _ln_linear(gamma_ref, beta_ref, x_ref, w_ref)
    scale = 1.0 / (1.0 - p)
    z = z * jnp.where(u_ref[...] >= p, scale, 0.0)
    o_ref[...] = (x + z).astype(o_ref.dtype)


def fused_residual_connection_linear(x, w, gamma, beta, dropout_p, key=None):
    shape = x.shape
    d = shape[-1]
    assert d > 1
    x2 = x.reshape(-1, d)
    rows = x2.shape[0]
    # budget: leave room for the resident W block + double-buffered x/u/out
    w_bytes = d * d * max(4, w.dtype.itemsize)
    budget = max(1 << 20, (8 << 20) - w_bytes)
    row_tile = _pick_row_tile(rows, d * 4, budget_bytes=budget)
    grid = (rows // row_tile,)
    xspec = pl.BlockSpec((row_tile, d), lambda i: (i, 0))
    wspec = pl.BlockSpec((d, d), lambda i: (0, 0))
    g = gamma.astype(jnp.float32)
    b = beta.astype(jnp.float32)
    if dropout_p > 0.0:
        assert 0.0 < dropout_p < 1.0, "dropout p must be in [0, 1)"
        assert key is not None, "need a PRNG key for dropout"
        u = jax.random.uniform(key, (rows, d), dtype=jnp.float32)
        kernel = functools.partial(_fused_train_kernel, p=float(dropout_p))
        out = pl.pallas_call(
            kernel,
            out_shape=jax.ShapeDtypeStruct((rows, d), x.dtype),
            grid=grid,
            in_specs=[_SMEM_SPEC, _SMEM_SPEC, xspec, wspec, xspec],
            out_specs=xspec,
            compiler_params=_PARALLEL,
        )(g, b, x2, w, u)
    else:
        out = pl.pallas_call(
            _fused_eval_kernel,
            out_shape=jax.ShapeDtypeStruct((rows, d), x.dtype),
            grid=grid,
            in_specs=[_SMEM_SPEC, _SMEM_SPEC, xspec, wspec],
            out_specs=xspec,
            compiler_params=_PARALLEL,
        )(g, b, x2, w)
    return out.reshape(shape)


# ----------------------------------------------------------------------------
# Pure-JAX reference (dropout disabled) for correctness checks.
# ----------------------------------------------------------------------------
def _reference_no_dropout(x, sublayer, gamma, beta):
    mean = jnp.mean(x, axis=-1, keepdims=True)
    diff = x - mean
    var = jnp.sum(diff * diff, axis=-1, keepdims=True) / (x.shape[-1] - 1)
    std = jnp.sqrt(var)
    y = gamma[0] * (diff / (std + EPS)) + beta[0]
    return x + sublayer(y)


if __name__ == "__main__":
    B, S, D = 2, 8, 32
    key = jax.random.PRNGKey(0)
    kx, kw, kd = jax.random.split(key, 3)

    x = jax.random.normal(kx, (B, S, D), dtype=jnp.float32)

    # LayerNormalization params: scalar gamma/beta initialized to ones.
    gamma = jnp.ones((1,), jnp.float32)
    beta = jnp.ones((1,), jnp.float32)

    # Sublayer: a small linear projection.
    W = jax.random.normal(kw, (D, D), dtype=jnp.float32) * 0.02
    sublayer = lambda y: jnp.dot(y, W)

    ref = _reference_no_dropout(x, sublayer, gamma, beta)

    # 1) split path (opaque sublayer), dropout disabled
    out_split = residual_connection(x, sublayer, gamma, beta, 0.0)
    assert jnp.allclose(out_split, ref, atol=1e-5, rtol=1e-5), "split path mismatch"

    # 2) fused path (known linear sublayer), dropout disabled
    out_fused = fused_residual_connection_linear(x, W, gamma, beta, 0.0)
    assert jnp.allclose(out_fused, ref, atol=1e-5, rtol=1e-5), "fused path mismatch"

    # 3) training-mode runs with dropout p = 0.1 (mask from jax.random)
    out_train_split = residual_connection(x, sublayer, gamma, beta, 0.1, kd)
    out_train_fused = fused_residual_connection_linear(x, W, gamma, beta, 0.1, kd)
    jax.block_until_ready((out_train_split, out_train_fused))

    print("KERNEL_OK")
</pallas_src>

<mosaic_0001>
module attributes {stable_mosaic.version = 11 : i64} {
  func.func @_layernorm_kernel(%arg0: i32, %arg1: memref<1xf32, #tpu.memory_space<smem>>, %arg2: memref<1xf32, #tpu.memory_space<smem>>, %arg3: memref<16x32xf32, #tpu.memory_space<vmem>>, %arg4: memref<16x32xf32, #tpu.memory_space<vmem>>) attributes {dimension_semantics = [#tpu.dimension_semantics<parallel>], iteration_bounds = array<i64: 1>, scalar_prefetch = 0 : i64, scratch_operands = 0 : i64, tpu.core_type = #tpu.core_type<tc>, window_params = [{transform_indices = @transform_0, window_bounds = array<i64: 1>}, {transform_indices = @transform_1, window_bounds = array<i64: 1>}, {transform_indices = @transform_2, window_bounds = array<i64: 16, 32>}, {transform_indices = @transform_3, window_bounds = array<i64: 16, 32>}]} {
    %c0 = arith.constant 0 : index
    %c0_0 = arith.constant 0 : index
    %0 = vector.load %arg3[%c0, %c0_0] : memref<16x32xf32, #tpu.memory_space<vmem>>, vector<16x32xf32>
    %cst = arith.constant dense<0.000000e+00> : vector<16xf32>
    %1 = vector.multi_reduction <add>, %0, %cst [1] : vector<16x32xf32> to vector<16xf32>
    %2 = vector.shape_cast %1 : vector<16xf32> to vector<16x1xf32>
    %cst_1 = arith.constant 3.200000e+01 : f32
    %3 = vector.broadcast %cst_1 : f32 to vector<16x1xf32>
    %4 = arith.divf %2, %3 : vector<16x1xf32>
    %5 = vector.broadcast %4 : vector<16x1xf32> to vector<16x32xf32>
    %6 = arith.subf %0, %5 : vector<16x32xf32>
    %7 = arith.mulf %6, %6 : vector<16x32xf32>
    %cst_2 = arith.constant dense<0.000000e+00> : vector<16xf32>
    %8 = vector.multi_reduction <add>, %7, %cst_2 [1] : vector<16x32xf32> to vector<16xf32>
    %9 = vector.shape_cast %8 : vector<16xf32> to vector<16x1xf32>
    %cst_3 = arith.constant 3.100000e+01 : f32
    %10 = vector.broadcast %cst_3 : f32 to vector<16x1xf32>
    %11 = arith.divf %9, %10 : vector<16x1xf32>
    %12 = math.sqrt %11 : vector<16x1xf32>
    %cst_4 = arith.constant 9.99999997E-7 : f32
    %13 = vector.broadcast %cst_4 : f32 to vector<16x1xf32>
    %14 = arith.addf %12, %13 : vector<16x1xf32>
    %cst_5 = arith.constant 1.000000e+00 : f32
    %15 = vector.broadcast %cst_5 : f32 to vector<16x1xf32>
    %16 = arith.divf %15, %14 : vector<16x1xf32>
    %c0_6 = arith.constant 0 : index
    %17 = memref.load %arg1[%c0_6] : memref<1xf32, #tpu.memory_space<smem>>
    %18 = vector.broadcast %16 : vector<16x1xf32> to vector<16x32xf32>
    %19 = arith.mulf %6, %18 : vector<16x32xf32>
    %20 = vector.broadcast %17 : f32 to vector<16x32xf32>
    %21 = arith.mulf %20, %19 : vector<16x32xf32>
    %c0_7 = arith.constant 0 : index
    %22 = memref.load %arg2[%c0_7] : memref<1xf32, #tpu.memory_space<smem>>
    %23 = vector.broadcast %22 : f32 to vector<16x32xf32>
    %24 = arith.addf %21, %23 : vector<16x32xf32>
    %c0_8 = arith.constant 0 : index
    %c0_9 = arith.constant 0 : index
    %25 = vector.load %arg4[%c0_8, %c0_9] : memref<16x32xf32, #tpu.memory_space<vmem>>, vector<16x32xf32>
    tpu.vector_store %arg4[%c0_8, %c0_9], %24 {strides = array<i32>} : memref<16x32xf32, #tpu.memory_space<vmem>>, vector<16x32xf32>,
    return
  }
  func.func @transform_0(%arg0: i32) -> i32 {
    %c0_i32 = arith.constant 0 : i32
    %c0_i32_0 = arith.constant 0 : i32
    return %c0_i32 : i32
  }
  func.func @transform_1(%arg0: i32) -> i32 {
    %c0_i32 = arith.constant 0 : i32
    %c0_i32_0 = arith.constant 0 : i32
    return %c0_i32 : i32
  }
  func.func @transform_2(%arg0: i32) -> (i32, i32) {
    %c0_i32 = arith.constant 0 : i32
    %c0_i32_0 = arith.constant 0 : i32
    return %arg0, %c0_i32 : i32, i32
  }
  func.func @transform_3(%arg0: i32) -> (i32, i32) {
    %c0_i32 = arith.constant 0 : i32
    %c0_i32_0 = arith.constant 0 : i32
    return %arg0, %c0_i32 : i32, i32
  }
}

</mosaic_0001>

<bundles_post_ra>
// kernel: tpu_custom_call.1
= control target key start
LH: loop header
LB: loop body
LE: loop exit
PB: predicated region body
PF: predicated region fallthrough
CT: control target
= control target key end

     0   :  { %10 = vsyncpa [#allocation5], 0  ;;  %s209_s0 = inlined_call_operand.<no memory space> [shape: f32[1], index: 0, kind: input, shape index: {}]   ;;  %s210_s1 = inlined_call_operand.<no memory space> [shape: f32[1], index: 1, kind: input, shape index: {}]   ;;  %s211_s2 = inlined_call_operand.hbm [shape: f32[16,32], index: 2, kind: input, shape index: {}]   ;;  %s212_s3 = inlined_call_operand.hbm [shape: f32[16,32], index: 3, kind: output, shape index: {}]  }
   0x1   :  { %11 = vsyncpa [#allocation6], 0  ;;  %s161_s12 = smov [#allocation4]  }
   0x2   :  { %s21_s13 = sshll.u32 %s161_s12, 4  ;;  %s22_s13 = int_to_ptr.vmem [resolvable:$true] %s21_s13 }
   0x3   :  { %s125_s14 = scalar_lea.vmem %s22_s13, 256  ;;  %p130_p1 = scmp.lt.s32.totalorder %s22_s13, %s22_s13 }
   0x4   :  { %p126_p0 = scmp.ne.s32.totalorder %s22_s13, %s125_s14  ;;  %p131_p2 = scmp.lt.s32.totalorder %s125_s14, %s125_s14 }
   0x6   :  { %p132_p3 = por %p131_p2, %p130_p1 }
   0x8   :  { %p133_p4 = pnand %p132_p3, %p126_p0 }
   0xa   :  { %136 = shalt.err (!%p133_p4)
}
   0xb   :  { %s162_s15 = smov 128   ;;  %s163_s16 = smov 8  }
   0xc   :  { %27 = dma.hbm_to_vmem [thread:$0]  %s211_s2, 256, %s22_s13, [#allocation5], %s162_s15, %s162_s15, %s163_s16  }
   0xd   :  { %157 = dma.done.wait [#allocation5], 256  }
   0xe   :  { %158 = vsyncadd [#allocation5], 4294967040  ;;  %vm33_vm0 = vcmask 261120   ;;  %v31_v0 = vld [vmem:[#allocation4] sm:$0xff]  ;;  %v32_v1 = vld [vmem:[#allocation4 + $0x8] sm:$0xff]  ;;  %v79_v31 = vstv %s209_s0  ;;  %v83_v33 = vstv %s210_s1  ;;  %s164_s22 = smov [#allocation7]  }
   0xf   :  { %v34_v2 = vsel %vm33_vm0, %v31_v0, 0.0  ;;  %v37_v3 = vsel %vm33_vm0, %v32_v1, 0.0  ;;  %s93_s23 = sshll.u32 %s164_s22, 4  ;;  %s94_s23 = int_to_ptr.vmem [resolvable:$true] %s93_s23 }
  0x10   :  { %35 = vadd.xlane.f32.xlu0 %v34_v2  ;;  %s137_s24 = scalar_lea.vmem %s94_s23, 256  ;;  %p142_p6 = scmp.lt.s32.totalorder %s94_s23, %s94_s23 }
  0x11   :  { %p138_p5 = scmp.ne.s32.totalorder %s94_s23, %s137_s24  ;;  %p143_p7 = scmp.lt.s32.totalorder %s137_s24, %s137_s24 }
  0x13   :  { %p144_p8 = por %p143_p7, %p142_p6 }
  0x14   :  { %38 = vadd.xlane.f32.xlu0 %v37_v3 }
  0x15   :  { %p145_p9 = pnand %p144_p8, %p138_p5 }
  0x99   :  { %v36_v4 = vpop.xlane.xlu0 %35 }
  0x9a   :  { %v41_v5 = vmul.f32 0.03125, %v36_v4 }
  0x9c   :  { %v43_v6 = vsub.f32 %v31_v0, %v41_v5 }
  0x9d   :  { %v39_v7 = vpop.xlane.xlu0 %38 }
  0x9e   :  { %v42_v8 = vmul.f32 0.03125, %v39_v7  ;;  %v45_v9 = vmul.f32 %v43_v6, %v43_v6 }
  0xa0   :  { %v44_v10 = vsub.f32 %v32_v1, %v42_v8  ;;  %v47_v11 = vsel %vm33_vm0, %v45_v9, 0.0 }
  0xa1   :  { %48 = vadd.xlane.f32.xlu1 %v47_v11 }
  0xa2   :  { %v46_v12 = vmul.f32 %v44_v10, %v44_v10 }
  0xa4   :  { %v50_v13 = vsel %vm33_vm0, %v46_v12, 0.0 }
  0xa5   :  { %51 = vadd.xlane.f32.xlu1 %v50_v13 }
 0x12a   :  { %v49_v14 = vpop.xlane.xlu1 %48 }
 0x12b   :  { %v54_v15 = vmul.f32 0.032258064, %v49_v14 }
 0x12d   :  { %109 = vrsqrt.f32 %v54_v15  ;;  %vm58_vm1 = vcmp.eq.f32.partialorder %v54_v15, inf  ;;  %v61_v20 = vand.u32 2147483648, %v54_v15  ;;  %vm60_vm2 = vcmp.eq.f32.partialorder %v54_v15, 0.0 }
 0x12e   :  { %v52_v16 = vpop.xlane.xlu1 %51 }
 0x12f   :  { %v55_v17 = vmul.f32 0.032258064, %v52_v16 }
 0x131   :  { %111 = vrsqrt.f32 %v55_v17  ;;  %vm65_vm3 = vcmp.eq.f32.partialorder %v55_v17, inf  ;;  %v68_v26 = vand.u32 2147483648, %v55_v17  ;;  %vm67_vm4 = vcmp.eq.f32.partialorder %v55_v17, 0.0 }
 0x13a   :  { %v110_v18 = vpop.eup %109 }
 0x13b   :  { %v57_v19 = vmul.f32 %v110_v18, %v54_v15 }
 0x13d   :  { %v59_v21 = vsel %vm58_vm1, %v54_v15, %v57_v19 }
 0x13e   :  { %v112_v22 = vpop.eup %111  ;;  %v62_v23 = vsel %vm60_vm2, %v61_v20, %v59_v21 }
 0x13f   :  { %v70_v24 = vadd.f32 1e-06, %v62_v23  ;;  %v64_v25 = vmul.f32 %v112_v22, %v55_v17 }
 0x141   :  { %113 = vrcp.f32 %v70_v24  ;;  %v66_v27 = vsel %vm65_vm3, %v55_v17, %v64_v25 }
 0x142   :  { %v69_v28 = vsel %vm67_vm4, %v68_v26, %v66_v27 }
 0x143   :  { %v71_v29 = vadd.f32 1e-06, %v69_v28 }
 0x145   :  { %115 = vrcp.f32 %v71_v29 }
 0x14e   :  { %v114_v30 = vpop.eup %113 }
 0x14f   :  { %v77_v32 = vmul.f32 %v114_v30, %v43_v6 }
 0x151   :  { %v80_v34 = vmul.f32 %v79_v31, %v77_v32 }
 0x152   :  { %v116_v35 = vpop.eup %115 }
 0x153   :  { %v78_v36 = vmul.f32 %v116_v35, %v44_v10  ;;  %v84_v37 = vadd.f32 %v83_v33, %v80_v34 }
 0x155   :  { %v81_v38 = vmul.f32 %v79_v31, %v78_v36  ;;  %86 = vst.msk [vmem:[#allocation7] sm:$0xff] %vm33_vm0, %v84_v37 }
 0x157   :  { %v85_v39 = vadd.f32 %v83_v33, %v81_v38 }
 0x159   :  { %87 = vst.msk [vmem:[#allocation7 + $0x8] sm:$0xff] %vm33_vm0, %v85_v39 }
 0x15a   :  { %148 = shalt.err (!%p145_p9)
}
 0x15b   :  { %99 = dma.vmem_to_hbm [thread:$0]  %s94_s23, 256, %s212_s3, [#allocation6], %s162_s15, %s162_s15, %s163_s16  }
 0x15c   :  { %159 = dma.done.wait [#allocation6], 256  }
 0x15d   :  { %160 = vsyncadd [#allocation6], 4294967040 }
 0x15e   :  { %103 = vsyncpa [#allocation5], 1 }
 0x15f   :  { %104 = vsyncpa [#allocation6], 1 }

</bundles_post_ra>
